<compile_context>
chip_gen: v5e
topology: v5e:2x2
jax: 0.10.0
libtpu: 0.0.40
codegen_flags: <defaults>
</compile_context>

<pallas_src>
import functools

import jax
import jax.numpy as jnp
from jax import lax
from jax.experimental import pallas as pl
from jax.experimental.pallas import tpu as pltpu

BN_EPS = 1e-5
_DEFAULT_MAX_HW_TILE = 8192


# ----------------------------------------------------------------------------
# VMEM budgeting / tile selection
# ----------------------------------------------------------------------------
def _vmem_caps():
    """Return (tile_budget_bytes, vmem_limit_bytes) from per-core physical VMEM."""
    cap = 64 * 1024 * 1024  # conservative fallback = v7x per-core VMEM
    try:
        info = pltpu.get_tpu_info()
        cap = int(getattr(info, "vmem_capacity_bytes", cap)) or cap
    except Exception:
        pass
    return int(cap * 0.70), int(cap * 0.90)


def _tile_bytes(thw, cin, cout, dsz_in, dsz_mx):
    """Approximate VMEM working set for one (Cin, thw) spatial tile (worst pass)."""
    x_io = 2 * cin * thw * dsz_in          # input tile, double-buffered
    out_io = 2 * cout * thw * dsz_in       # output tile, double-buffered
    y_tmp = cout * thw * 4                 # f32 matmul result temp (apply pass)
    xr_tmp = cin * thw * dsz_mx            # relu / cast temp
    w_buf = 2 * cout * cin * dsz_mx        # weights
    misc = (cin * cin + 8 * cout) * 4      # Gram / partial sums / scale / shift
    return x_io + out_io + y_tmp + xr_tmp + w_buf + misc


def _select_tile(hw, n, cin, cout, dsz_in, dsz_mx, budget, max_hw_tile):
    """Return (padded_hw, tile_hw). tile_hw divides padded_hw."""
    cap = max_hw_tile or _DEFAULT_MAX_HW_TILE

    def fits(t):
        return _tile_bytes(t, cin, cout, dsz_in, dsz_mx) <= budget

    if hw % 128 != 0:
        # Full-extent block is always layout-legal; use it if it fits in VMEM.
        if hw <= cap and fits(hw):
            return hw, hw
        hw_p = ((hw + 127) // 128) * 128   # zero-pad (safe: relu(0)=0, exact-M divisor)
    else:
        hw_p = hw

    cands = [t for t in range(128, min(hw_p, cap) + 1, 128) if hw_p % t == 0]
    cands = cands or [128]
    good = [t for t in cands if fits(t)] or cands[:1]
    tile = good[-1]
    # Keep >=2 parallel grid steps so megacore (v7x) can split the apply pass.
    while n * (hw_p // tile) < 2 and len(good) > 1:
        good.pop()
        tile = good[-1]
    return hw_p, tile


# ----------------------------------------------------------------------------
# Kernels
# ----------------------------------------------------------------------------
def _stats_gram_kernel(x_ref, g_ref, s_ref, *, mxu_dtype):
    """Per-batch partial Gram G += relu(x) relu(x)^T and sum s += sum(relu(x)).

    Grid = (N, n_hw_tiles); batch axis "parallel", tile axis "arbitrary".
    Accumulates directly in the resident output block (same block index over t).
    """
    t = pl.program_id(1)

    @pl.when(t == 0)
    def _init():
        g_ref[...] = jnp.zeros_like(g_ref)
        s_ref[...] = jnp.zeros_like(s_ref)

    xr = jnp.maximum(x_ref[...], 0).astype(mxu_dtype)              # (Cin, tHW)
    g_ref[...] += lax.dot_general(xr, xr, (((1,), (1,)), ((), ())),
                                  preferred_element_type=jnp.float32)
    s_ref[...] += jnp.sum(xr.astype(jnp.float32), axis=1, keepdims=True)


def _stats_direct_kernel(x_ref, w_ref, sum_ref, sq_ref):
    """Per-batch partial sum / sum-of-squares of y = W @ relu(x) (Cin > Cout path)."""
    t = pl.program_id(1)

    @pl.when(t == 0)
    def _init():
        sum_ref[...] = jnp.zeros_like(sum_ref)
        sq_ref[...] = jnp.zeros_like(sq_ref)

    xr = jnp.maximum(x_ref[...], 0).astype(w_ref.dtype)            # (Cin, tHW)
    y = jnp.dot(w_ref[...], xr, preferred_element_type=jnp.float32)  # (Cout, tHW)
    sum_ref[...] += jnp.sum(y, axis=1, keepdims=True)
    sq_ref[...] += jnp.sum(y * y, axis=1, keepdims=True)


def _apply_kernel(x_ref, w_ref, scale_ref, shift_ref, o_ref):
    """out = (W @ relu(x)) * scale + shift, lane-dense (HW on lanes)."""
    xr = jnp.maximum(x_ref[...], 0).astype(w_ref.dtype)
    y = jnp.dot(w_ref[...], xr, preferred_element_type=jnp.float32)
    o_ref[...] = (y * scale_ref[...] + shift_ref[...]).astype(o_ref.dtype)


# ----------------------------------------------------------------------------
# Wrapper
# ----------------------------------------------------------------------------
def convblock_forward(x_nchw, w, b, gamma, beta, *, max_hw_tile=None):
    """x_nchw: (N, Cin, H, W); w: (Cout, Cin, 1, 1); b/gamma/beta: (Cout,).

    `b` (conv bias) is accepted for API parity but cancels exactly under
    training-mode BatchNorm, so it is not used by the kernels.
    Output dtype == input dtype (feed bf16 for best HBM/MXU utilization).
    """
    del b
    N, Cin, H, W = x_nchw.shape
    Cout = w.shape[0]
    HW = H * W
    M = float(N * HW)

    in_dtype = x_nchw.dtype
    mxu_dtype = jnp.bfloat16 if in_dtype == jnp.bfloat16 else jnp.float32
    dsz_in = jnp.dtype(in_dtype).itemsize
    dsz_mx = jnp.dtype(mxu_dtype).itemsize

    budget, vmem_limit = _vmem_caps()
    hw_p, thw = _select_tile(HW, N, Cin, Cout, dsz_in, dsz_mx, budget, max_hw_tile)
    grid = (N, hw_p // thw)

    x3 = x_nchw.reshape(N, Cin, HW)                   # contiguous reshape, no dtype cast
    if hw_p != HW:
        x3 = jnp.pad(x3, ((0, 0), (0, 0), (0, hw_p - HW)))
    w2 = w.reshape(Cout, Cin).astype(mxu_dtype)

    stats_params = pltpu.CompilerParams(
        dimension_semantics=("parallel", "arbitrary"),
        vmem_limit_bytes=vmem_limit)

    # --------------------------- Pass 1: BN statistics ----------------------
    if Cin <= Cout:
        # Gram formulation: G and s per batch, fold to mean / E[y^2] in JAX.
        g_parts, s_parts = pl.pallas_call(
            functools.partial(_stats_gram_kernel, mxu_dtype=mxu_dtype),
            out_shape=(jax.ShapeDtypeStruct((N, Cin, Cin), jnp.float32),
                       jax.ShapeDtypeStruct((N, Cin, 1), jnp.float32)),
            grid=grid,
            in_specs=[pl.BlockSpec((None, Cin, thw), lambda n, t: (n, 0, t))],
            out_specs=(pl.BlockSpec((None, Cin, Cin), lambda n, t: (n, 0, 0)),
                       pl.BlockSpec((None, Cin, 1), lambda n, t: (n, 0, 0))),
            compiler_params=stats_params,
        )(x3)
        w_f = w2.astype(jnp.float32)                  # same rounding as the apply pass
        g = jnp.sum(g_parts, axis=0)                  # (Cin, Cin)
        s = jnp.sum(s_parts, axis=0)                  # (Cin, 1)
        mean = (w_f @ s) / M                          # (Cout, 1)
        ey2 = jnp.sum((w_f @ g) * w_f, axis=1, keepdims=True) / M
    else:
        sum_parts, sq_parts = pl.pallas_call(
            _stats_direct_kernel,
            out_shape=(jax.ShapeDtypeStruct((N, Cout, 1), jnp.float32),
                       jax.ShapeDtypeStruct((N, Cout, 1), jnp.float32)),
            grid=grid,
            in_specs=[pl.BlockSpec((None, Cin, thw), lambda n, t: (n, 0, t)),
                      pl.BlockSpec((Cout, Cin), lambda n, t: (0, 0))],
            out_specs=(pl.BlockSpec((None, Cout, 1), lambda n, t: (n, 0, 0)),
                       pl.BlockSpec((None, Cout, 1), lambda n, t: (n, 0, 0))),
            compiler_params=stats_params,
        )(x3, w2)
        mean = jnp.sum(sum_parts, axis=0) / M
        ey2 = jnp.sum(sq_parts, axis=0) / M

    # Tiny fold (per-channel) done in plain JAX.
    # TODO(synk): consider a shifted/Welford update if activations have |mean| >> std.
    var = jnp.maximum(ey2 - mean * mean, 0.0)         # biased (training-mode BN)
    g2 = gamma.reshape(Cout, 1).astype(jnp.float32)
    b2 = beta.reshape(Cout, 1).astype(jnp.float32)
    scale = g2 * lax.rsqrt(var + BN_EPS)
    shift = b2 - mean * scale

    # --------------------------- Pass 2: conv + folded BN -------------------
    out3 = pl.pallas_call(
        _apply_kernel,
        out_shape=jax.ShapeDtypeStruct((N, Cout, hw_p), in_dtype),
        grid=grid,
        in_specs=[pl.BlockSpec((None, Cin, thw), lambda n, t: (n, 0, t)),
                  pl.BlockSpec((Cout, Cin), lambda n, t: (0, 0)),
                  pl.BlockSpec((Cout, 1), lambda n, t: (0, 0)),
                  pl.BlockSpec((Cout, 1), lambda n, t: (0, 0))],
        out_specs=pl.BlockSpec((None, Cout, thw), lambda n, t: (n, 0, t)),
        compiler_params=pltpu.CompilerParams(
            dimension_semantics=("parallel", "parallel"),
            vmem_limit_bytes=vmem_limit),
    )(x3, w2, scale, shift)

    if hw_p != HW:
        out3 = out3[:, :, :HW]
    return out3.reshape(N, Cout, H, W)


# ----------------------------------------------------------------------------
# Pure-JAX reference (mirrors PyTorch ConvBlock.forward, training-mode BN, keeps bias)
# ----------------------------------------------------------------------------
def reference_forward(x_nchw, w, b, gamma, beta):
    x = jnp.maximum(x_nchw, 0.0)
    y = jnp.einsum('nchw,oc->nohw', x, w.reshape(w.shape[0], w.shape[1])) \
        + b[None, :, None, None]
    mean = jnp.mean(y, axis=(0, 2, 3), keepdims=True)
    var = jnp.mean((y - mean) ** 2, axis=(0, 2, 3), keepdims=True)
    return (y - mean) / jnp.sqrt(var + BN_EPS) * gamma[None, :, None, None] \
        + beta[None, :, None, None]


if __name__ == "__main__":
    key = jax.random.PRNGKey(0)
    ks = jax.random.split(key, 5)

    # ---- Test 1: bf16 end-to-end, Cin <= Cout (Gram stats path), multi-tile grid.
    N, Cin, H, W, Cout = 2, 4, 16, 16, 8
    x_f = jax.random.normal(ks[0], (N, Cin, H, W), dtype=jnp.float32)
    w_f = jax.random.normal(ks[1], (Cout, Cin, 1, 1), dtype=jnp.float32) * 0.1
    b_f = jax.random.normal(ks[2], (Cout,), dtype=jnp.float32) * 0.1
    gam = 1.0 + 0.1 * jax.random.normal(ks[3], (Cout,), dtype=jnp.float32)
    bet = 0.1 * jax.random.normal(ks[4], (Cout,), dtype=jnp.float32)

    x_bf = x_f.astype(jnp.bfloat16)
    w_bf = w_f.astype(jnp.bfloat16)
    out1 = convblock_forward(x_bf, w_bf, b_f, gam, bet, max_hw_tile=128)  # grid (2, 2)
    out1 = jax.block_until_ready(out1)
    assert out1.shape == (N, Cout, H, W) and out1.dtype == jnp.bfloat16
    ref1 = reference_forward(x_bf.astype(jnp.float32), w_bf.astype(jnp.float32),
                             b_f, gam, bet)
    assert jnp.allclose(out1.astype(jnp.float32), ref1, atol=5e-2, rtol=5e-2), \
        "bf16 path mismatch vs reference"

    # ---- Test 2: f32, Cin > Cout (direct stats path), HW not a multiple of 128.
    N2, Cin2, H2, W2, Cout2 = 2, 8, 15, 15, 4
    k2 = jax.random.split(jax.random.PRNGKey(1), 5)
    x2 = jax.random.normal(k2[0], (N2, Cin2, H2, W2), dtype=jnp.float32)
    w2 = jax.random.normal(k2[1], (Cout2, Cin2, 1, 1), dtype=jnp.float32) * 0.1
    b2 = jax.random.normal(k2[2], (Cout2,), dtype=jnp.float32) * 0.1
    g2 = 1.0 + 0.1 * jax.random.normal(k2[3], (Cout2,), dtype=jnp.float32)
    bt2 = 0.1 * jax.random.normal(k2[4], (Cout2,), dtype=jnp.float32)

    out2 = convblock_forward(x2, w2, b2, g2, bt2)
    out2 = jax.block_until_ready(out2)
    ref2 = reference_forward(x2, w2, b2, g2, bt2)
    assert out2.shape == (N2, Cout2, H2, W2)
    assert jnp.allclose(out2, ref2, atol=1e-3, rtol=1e-3), "f32 path mismatch vs reference"

    print("KERNEL_OK")
</pallas_src>

<mosaic_0001>
module attributes {stable_mosaic.version = 11 : i64} {
  func.func @_stats_gram_kernel(%arg0: i32, %arg1: i32, %arg2: memref<1x4x128xbf16, #tpu.memory_space<vmem>>, %arg3: memref<1x4x4xf32, #tpu.memory_space<vmem>>, %arg4: memref<1x4x1xf32, #tpu.memory_space<vmem>>) attributes {dimension_semantics = [#tpu.dimension_semantics<parallel>, #tpu.dimension_semantics<arbitrary>], iteration_bounds = array<i64: 2, 2>, scalar_prefetch = 0 : i64, scratch_operands = 0 : i64, tpu.core_type = #tpu.core_type<tc>, window_params = [{transform_indices = @transform_0, window_bounds = array<i64: 1, 4, 128>}, {transform_indices = @transform_1, window_bounds = array<i64: 1, 4, 4>}, {transform_indices = @transform_2, window_bounds = array<i64: 1, 4, 1>}]} {
    %c0_i32 = arith.constant 0 : i32
    %0 = arith.cmpi eq, %arg1, %c0_i32 : i32
    %1 = arith.extui %0 : i1 to i32
    %c0_i32_0 = arith.constant 0 : i32
    %2 = arith.cmpi ne, %1, %c0_i32_0 : i32
    scf.if %2 {
      %cst_17 = arith.constant 0.000000e+00 : f32
      %23 = vector.broadcast %cst_17 : f32 to vector<4x4xf32>
      %c0_18 = arith.constant 0 : index
      %c0_19 = arith.constant 0 : index
      %c0_20 = arith.constant 0 : index
      %24 = vector.load %arg3[%c0_18, %c0_19, %c0_20] : memref<1x4x4xf32, #tpu.memory_space<vmem>>, vector<1x4x4xf32>
      %25 = vector.shape_cast %24 : vector<1x4x4xf32> to vector<4x4xf32>
      %26 = vector.shape_cast %23 : vector<4x4xf32> to vector<1x4x4xf32>
      tpu.vector_store %arg3[%c0_18, %c0_19, %c0_20], %26 {strides = array<i32>} : memref<1x4x4xf32, #tpu.memory_space<vmem>>, vector<1x4x4xf32>,
      %cst_21 = arith.constant 0.000000e+00 : f32
      %27 = vector.broadcast %cst_21 : f32 to vector<4x1xf32>
      %c0_22 = arith.constant 0 : index
      %c0_23 = arith.constant 0 : index
      %c0_24 = arith.constant 0 : index
      %28 = vector.load %arg4[%c0_22, %c0_23, %c0_24] : memref<1x4x1xf32, #tpu.memory_space<vmem>>, vector<1x4x1xf32>
      %29 = vector.shape_cast %28 : vector<1x4x1xf32> to vector<4x1xf32>
      %30 = vector.shape_cast %27 : vector<4x1xf32> to vector<1x4x1xf32>
      tpu.vector_store %arg4[%c0_22, %c0_23, %c0_24], %30 {strides = array<i32>} : memref<1x4x1xf32, #tpu.memory_space<vmem>>, vector<1x4x1xf32>,
    } else {
    }
    %c0 = arith.constant 0 : index
    %c0_1 = arith.constant 0 : index
    %c0_2 = arith.constant 0 : index
    %3 = vector.load %arg2[%c0, %c0_1, %c0_2] : memref<1x4x128xbf16, #tpu.memory_space<vmem>>, vector<1x4x128xbf16>
    %4 = vector.shape_cast %3 : vector<1x4x128xbf16> to vector<4x128xbf16>
    %cst = arith.constant 0.000000e+00 : bf16
    %5 = vector.broadcast %cst : bf16 to vector<4x128xbf16>
    %6 = arith.maximumf %4, %5 : vector<4x128xbf16>
    %c0_3 = arith.constant 0 : index
    %c0_4 = arith.constant 0 : index
    %c0_5 = arith.constant 0 : index
    %7 = vector.load %arg3[%c0_3, %c0_4, %c0_5] : memref<1x4x4xf32, #tpu.memory_space<vmem>>, vector<1x4x4xf32>
    %8 = vector.shape_cast %7 : vector<1x4x4xf32> to vector<4x4xf32>
    %cst_6 = arith.constant dense<0.000000e+00> : vector<4x4xf32>
    %9 = tpu.matmul %6, %6, %cst_6 {dimension_numbers = #tpu.dot_dimension_numbers<[1], [1], [0], [0], [0, 0, 1, 0], [], []>} : vector<4x128xbf16>, vector<4x128xbf16>, vector<4x4xf32> -> vector<4x4xf32>
    %10 = arith.addf %8, %9 : vector<4x4xf32>
    %c0_7 = arith.constant 0 : index
    %c0_8 = arith.constant 0 : index
    %c0_9 = arith.constant 0 : index
    %11 = vector.load %arg3[%c0_7, %c0_8, %c0_9] : memref<1x4x4xf32, #tpu.memory_space<vmem>>, vector<1x4x4xf32>
    %12 = vector.shape_cast %11 : vector<1x4x4xf32> to vector<4x4xf32>
    %13 = vector.shape_cast %10 : vector<4x4xf32> to vector<1x4x4xf32>
    tpu.vector_store %arg3[%c0_7, %c0_8, %c0_9], %13 {strides = array<i32>} : memref<1x4x4xf32, #tpu.memory_space<vmem>>, vector<1x4x4xf32>,
    %c0_10 = arith.constant 0 : index
    %c0_11 = arith.constant 0 : index
    %c0_12 = arith.constant 0 : index
    %14 = vector.load %arg4[%c0_10, %c0_11, %c0_12] : memref<1x4x1xf32, #tpu.memory_space<vmem>>, vector<1x4x1xf32>
    %15 = vector.shape_cast %14 : vector<1x4x1xf32> to vector<4x1xf32>
    %16 = arith.extf %6 : vector<4x128xbf16> to vector<4x128xf32>
    %cst_13 = arith.constant dense<0.000000e+00> : vector<4xf32>
    %17 = vector.multi_reduction <add>, %16, %cst_13 [1] : vector<4x128xf32> to vector<4xf32>
    %18 = vector.shape_cast %17 : vector<4xf32> to vector<4x1xf32>
    %19 = arith.addf %15, %18 : vector<4x1xf32>
    %c0_14 = arith.constant 0 : index
    %c0_15 = arith.constant 0 : index
    %c0_16 = arith.constant 0 : index
    %20 = vector.load %arg4[%c0_14, %c0_15, %c0_16] : memref<1x4x1xf32, #tpu.memory_space<vmem>>, vector<1x4x1xf32>
    %21 = vector.shape_cast %20 : vector<1x4x1xf32> to vector<4x1xf32>
    %22 = vector.shape_cast %19 : vector<4x1xf32> to vector<1x4x1xf32>
    tpu.vector_store %arg4[%c0_14, %c0_15, %c0_16], %22 {strides = array<i32>} : memref<1x4x1xf32, #tpu.memory_space<vmem>>, vector<1x4x1xf32>,
    return
  }
  func.func @transform_0(%arg0: i32, %arg1: i32) -> (i32, i32, i32) {
    %c0_i32 = arith.constant 0 : i32
    %c0_i32_0 = arith.constant 0 : i32
    return %arg0, %c0_i32, %arg1 : i32, i32, i32
  }
  func.func @transform_1(%arg0: i32, %arg1: i32) -> (i32, i32, i32) {
    %c0_i32 = arith.constant 0 : i32
    %c0_i32_0 = arith.constant 0 : i32
    %c0_i32_1 = arith.constant 0 : i32
    return %arg0, %c0_i32, %c0_i32_0 : i32, i32, i32
  }
  func.func @transform_2(%arg0: i32, %arg1: i32) -> (i32, i32, i32) {
    %c0_i32 = arith.constant 0 : i32
    %c0_i32_0 = arith.constant 0 : i32
    %c0_i32_1 = arith.constant 0 : i32
    return %arg0, %c0_i32, %c0_i32_0 : i32, i32, i32
  }
}

</mosaic_0001>

<bundles_post_ra>
// kernel: tpu_custom_call.1
= control target key start
LH: loop header
LB: loop body
LE: loop exit
PB: predicated region body
PF: predicated region fallthrough
CT: control target
= control target key end

     0   :  { %8 = vsyncpa [#allocation3], 0  ;;  %s828_s0 = inlined_call_operand.hbm [shape: bf16[2,4,256], index: 0, kind: input, shape index: {}]   ;;  %s829_s1 = inlined_call_operand.hbm [shape: f32[2,4,4], index: 1, kind: output, shape index: {0}]   ;;  %s830_s2 = inlined_call_operand.vmem [shape: f32[2,4,1], index: 2, kind: output, shape index: {1}]  }
   0x1   :  { %10 = vsyncpa [#allocation3 + $0x1], 0 }
   0x2   :  { %11 = vsyncpa [#allocation4], 0 }
   0x3   :  { %13 = vsyncpa [#allocation4 + $0x1], 0  ;;  %s646_s9 = smov 0   ;;  %s648_s10 = smov 0  }
   0x4   :  { %s650_s11 = smov 0   ;;  %s652_s12 = smov 0  }
   0x5   :  { %s654_s13 = smov 0   ;;  %s656_s14 = smov 0  }
   0x6   :  { %s658_s15 = smov 0   ;;  %s660_s16 = smov 0  }
   0x7   :  { %s662_s17 = smov 0   ;;  %s664_s18 = smov 0  }
   0x8   :  { %s666_s19 = smov 0  }
   0x9 LB: > { %s357_s20 = sadd.s32 4294967295, %s628_s19   ;;  %s358_s21 = sadd.s32 4294967294, %s628_s19   ;;  %s628_s19 = sphi %s666_s19, %s19_s19   ;;  %s624_s18 = sphi %s664_s18, %s850_s18   ;;  %s620_s17 = sphi %s662_s17, %s849_s17   ;;  %s616_s16 = sphi %s660_s16, %s848_s16   ;;  %s612_s15 = sphi %s658_s15, %s847_s15   ;;  %s608_s14 = sphi %s656_s14, %s846_s14   ;;  %s604_s13 = sphi %s654_s13, %s845_s13   ;;  %s600_s12 = sphi %s652_s12, %s844_s12   ;;  %s596_s11 = sphi %s650_s11, %s843_s11   ;;  %s592_s10 = sphi %s648_s10, %s842_s10   ;;  %s588_s9 = sphi %s646_s9, %s841_s9  }
   0xa   : > { %s28_s22 = sadd.s32 1, %s620_s17  ;;  %s31_s23 = sadd.s32 1, %s624_s18 }
   0xb   : > { %p29_p0 = scmp.ge.s32.totalorder %s28_s22, 2  ;;  %s40_s24 = sadd.s32 1, %s608_s14 }
   0xc   : > { %p47_p1 = scmp.ne.s32.totalorder %s608_s14, %s604_s13  ;;  %p48_p2 = scmp.eq.s32.totalorder %s628_s19, 0 }
   0xd   : > { %s852_s22 = smov (%p29_p0, %s28_s22), 0  ;;  %s854_s23 = smov (!%p29_p0, %s31_s23), %s624_s18 }
   0xe   : > { %833 = sst [smem:[#allocation8_spill]] %s852_s22  ;;  %s36_s25 = ssub.s32 %s620_s17, %s852_s22 }
   0xf   : > { %p712_p3 = por %p48_p2, %p47_p1  ;;  %p33_p4 = scmp.ge.s32.totalorder %s854_s23, 2 }
  0x10   : > { %p53_p5 = scmp.ne.s32.totalorder %s604_s13, %s600_s12  ;;  %p54_p6 = scmp.eq.s32.totalorder %s357_s20, 0 }
  0x11   : > { %s66_s27 = sadd.s32 1, %s596_s11  ;;  %s856_s23 = smov (%p33_p4, %s854_s23), 0 }
  0x12   : > { %835 = sst [smem:[#allocation9_spill]] %s856_s23  ;;  %p720_p7 = por %p54_p6, %p53_p5 }
  0x13   : > { %p76_p8 = scmp.ne.s32.totalorder %s596_s11, %s592_s10  ;;  %s35_s29 = ssub.s32 %s624_s18, %s856_s23 }
  0x14   : > { %p77_p9 = scmp.eq.s32.totalorder %s357_s20, 3  ;;  %s37_s30 = sor.u32 %s36_s25, %s35_s29 }
  0x15   : > { %p64_p10 = scmp.eq.s32.totalorder %s35_s29, 0  ;;  %p38_p11 = scmp.eq.s32.totalorder %s37_s30, 0 }
  0x16   : > { %p728_p12 = por %p77_p9, %p76_p8  ;;  %p82_p13 = scmp.ne.s32.totalorder %s592_s10, %s588_s9 }
  0x17   : > { %s733_s4 = scalar_select %p64_p10, %s596_s11, %s66_s27  }
  0x18   : > { %s736_s5 = scalar_select %p38_p11, %s608_s14, %s40_s24  }
  0x19   : > { %p83_p0 = scmp.eq.s32.totalorder %s358_s21, 3  ;;  %p385_p1 = scmp.lt.s32.totalorder %s628_s19, 4 }
  0x1a   : > { %s129_s7 = sand.u32 1, %s608_s14   ;;  %s362_s12 = sshll.u32 %s624_s18, 1 }
  0x1b   : > { %p741_p2 = por %p83_p0, %p82_p13  ;;  %s361_s8 = sshll.u32 %s129_s7, 1 }
  0x1c   : > { %s137_s20 = sadd.s32 %s620_s17, %s362_s12  ;;  %s133_s25 = scalar_lea.vmem [#allocation2], %s361_s8 }
  0x1d   : > { %s143_s29 = sshll.u32 %s133_s25, 4  ;;  %s363_s30 = sshll.u32 %s137_s20, 1  ;;  %s144_s29 = int_to_ptr.vmem [resolvable:$true] %s143_s29 }
  0x1e   : > { %s139_s23 = scalar_lea.hbm %s828_s0, %s363_s30  ;;  %p378_p4 = pnand %p385_p1, %p712_p3 }
  0x1f   : > { %s141_s21 = sshll.u32 %s139_s23, 4  ;;  %p364_p5 = scmp.ge.s32.totalorder %s628_s19, 1  ;;  %s142_s21 = int_to_ptr.hbm [resolvable:$true] %s141_s21 }
  0x20   : > { %s130_s22 = scalar_lea.sflag [#allocation3], %s129_s7  ;;  %p148_p6 = scmp.lt.s32.totalorder %s628_s19, 5 }
  0x21   : > { %380 = dma.hbm_to_vmem [thread:$0]  (!%p378_p4), %s142_s21, 32, %s144_s29, %s130_s22  }
  0x22   : > { %p149_p8 = pnand %p364_p5, %p148_p6 }
  0x23   : > { %s154_s8 = sand.u32 (!%p149_p8), 1, %s604_s13  }
  0x24   : > { %152 = sbr.rel (%p149_p8) target bundleno = 201 (0xc9), region = 24  ;;  %s365_s12 = sshll.u32 (!%p149_p8), %s154_s8, 1 }
  0x25   : > { %s155_s20 = scalar_lea.sflag (!%p149_p8), [#allocation3], %s154_s8  ;;  %s158_s25 = scalar_lea.vmem (!%p149_p8), [#allocation2], %s365_s12 }
  0x29   : > { %579 = dma.done.wait (%p720_p7), %s155_s20, 32  }
  0x2a   : > { %581 = vsyncadd (%p720_p7), %s155_s20, 4294967264  ;;  %s175_s23 = sand.u32 1, %s592_s10   ;;  %p184_p3 = scmp.lt.s32.totalorder %s616_s16, 1 }
  0x2b   : > { %s366_s22 = sshll.u32 %s175_s23, 2  ;;  %p368_p9 = scmp.ne.s32.totalorder %s612_s15, 0 }
  0x2c   : > { %s185_s26 = scalar_select %p184_p3, %s616_s16, 1 }
  0x2d   : > { %s768_s24 = scalar_lea.vmem [#allocation5], %s366_s22  ;;  %192 = sbr.rel (%p368_p9) target bundleno = 53 (0x35), region = 32 }
  0x2e   : > { %s367_s7 = sshll.u32 %s185_s26, 2 }
  0x2f   : > { %s187_s27 = scalar_lea.vmem %s830_s2, %s367_s7 }
  0x32   : > { %vm193_vm0 = vcmask 27648   ;;  %vm195_vm1 = vcmask 3072   ;;  %v630_v0 = vmov 0.0  }
  0x33   : > { %194 = vst.msk [vmem:[%s768_s24] sm:$0xf] %vm193_vm0, %v630_v0 }
  0x34   : > { %196 = vst.msk [vmem:[%s187_s27] sm:$0xf] %vm195_vm1, %v630_v0 }
  0x35 PF: > { %v197_v1 = vld [vmem:[%s158_s25] sm:$0x3]  ;;  %vm220_vm2 = vcmask 1043456   ;;  %vm225_vm3 = vcmask 3072   ;;  %s370_s15 = sshll.u32 %s616_s16, 2  ;;  %s244_s12 = sshll.u32 %s768_s24, 4  ;;  %s245_s12 = int_to_ptr.vmem [resolvable:$true] %s244_s12 }
  0x36   : > { %v198_v2 = vunpack.c.l.bf16 %v197_v1  ;;  %s242_s8 = scalar_lea.hbm %s829_s1, %s370_s15  ;;  %vm216_vm4 = vcmask 27648   ;;  %s228_s25 = scalar_lea.sflag [#allocation4], %s175_s23 }
  0x37   : > { %s246_s20 = sshll.u32 %s242_s8, 4  ;;  %s526_s29 = scalar_lea.hbm %s829_s1, 8  ;;  %s247_s20 = int_to_ptr.hbm [resolvable:$true] %s246_s20 }
  0x38   : > { %v199_v3 = vmax.f32 %v198_v2, 0.0  ;;  %s520_s22 = sshra.s32 %s247_s20, 4  ;;  %s521_s22 = int_to_ptr.hbm [resolvable:$true] %s520_s22 }
  0x39   : > { %s522_s26 = scalar_lea.hbm %s521_s22, 4  ;;  %p527_p13 = scmp.lt.s32.totalorder %s521_s22, %s829_s1 }
  0x3a   : > { %v200_v4 = vpack.c.bf16 %v199_v3, %v199_v3  ;;  %v201_v10 = vld [vmem:[%s768_s24] sm:$0xf]  ;;  %p523_p7 = scmp.ne.s32.totalorder %s521_s22, %s522_s26  ;;  %p528_p0 = scmp.lt.s32.totalorder %s526_s29, %s522_s26 }
  0x3b   : > { %v218_v7 = vld [vmem:[%s187_s27] sm:$0xf] }
  0x3c   : > { %209 = vmatpush.bf16.xpose.msra.mxu0 %v200_v4  ;;  %v219_v5 = vunpack.c.l.bf16 %v200_v4  ;;  %p524_p10 = pnand %p523_p7, %p728_p12  ;;  %p529_p1 = por %p528_p0, %p527_p13 }
  0x3e   : > { %v221_v6 = vsel %vm220_vm2, %v219_v5, 0.0  ;;  %p525_p11 = pneg %p524_p10 }
  0x3f   : > { %222 = vadd.xlane.f32.xlu0 %v221_v6 }
  0x40   : > { %p530_p4 = pnand %p529_p1, %p525_p11 }
  0x43   : > { %210 = vmatmul.bf16.vlgmr.msra.gmra.mxu0 %v200_v4 }
  0xb2   : > { %v223_v8 = vpop.xlane.xlu0 %222 }
  0xb3   : > { %v224_v9 = vadd.f32 %v223_v8, %v218_v7 }
  0xb5   : > { %226 = vst.msk [vmem:[%s187_s27] sm:$0xf] %vm225_vm3, %v224_v9 }
  0xc0   : > { %v211_v11 = vpop.f32.mrf.mxu0 }
  0xc1   : > { %v215_v12 = vadd.f32 %v211_v11, %v201_v10 }
  0xc3   : > { %217 = vst.msk [vmem:[%s768_s24] sm:$0xf] %vm216_vm4, %v215_v12 }
  0xc4   : > { %533 = shalt.err (!%p530_p4)
}
  0xc5   : > { %375 = dma.vmem_to_hbm [thread:$0]  (%p728_p12), %s245_s12, 64, %s247_s20, %s228_s25  }
  0xc8   : > { %v213_v13 = vpop.f32.mrf.mxu0 }
  0xc9 PF: > { %p386_p5 = scmp.ge.s32.totalorder %s628_s19, 2  ;;  %s261_s23 = sand.u32 1, %s588_s9  }
  0xca   : > { %s262_s24 = scalar_lea.sflag [#allocation4], %s261_s23 }
  0xcb   : > { %p382_p6 = pnand %p386_p5, %p741_p2 }
  0xcd   : > { %p383_p8 = pneg %p382_p6 }
  0xcf   : > { %583 = dma.done.wait (%p383_p8), %s262_s24, 64  }
  0xd0   : > { %585 = vsyncadd (%p383_p8), %s262_s24, 4294967232  ;;  %s19_s19 = sadd.s32 1, %s628_s19   ;;  %s839_s3 = sld [smem:[#allocation8_spill]] }
  0xd1   : > { %p16_p3 = scmp.ge.s32.totalorder %s19_s19, 6   ;;  %s840_s28 = sld [smem:[#allocation9_spill]] }
  0xd2   : > { %s841_s9 = smov %s592_s10  ;;  %s842_s10 = smov %s596_s11 }
  0xd3   : > { %s843_s11 = smov %s733_s4  ;;  %s844_s12 = smov %s604_s13 }
  0xd4   : > { %s845_s13 = smov %s608_s14  ;;  %s846_s14 = smov %s736_s5 }
  0xd5   : > { %s847_s15 = smov %s620_s17  ;;  %s848_s16 = smov %s624_s18 }
  0xd6   : > { %s849_s17 = smov %s839_s3  ;;  %18 = sbr.rel (!%p16_p3) target bundleno = 9 (0x9), region = 85 }
  0xd7   : > { %s850_s18 = smov %s840_s28 }
  0xdb   :  { %275 = vsyncpa [#allocation3], 1 }
  0xdc   :  { %277 = vsyncpa [#allocation3 + $0x1], 1 }
  0xdd   :  { %278 = vsyncpa [#allocation4], 1 }
  0xde   :  { %280 = vsyncpa [#allocation4 + $0x1], 1 }

</bundles_post_ra>
